<compile_context>
chip_gen: v7x
topology: tpu7x:2x2x1
jax: 0.10.0
libtpu: 0.0.40
codegen_flags: <defaults>
</compile_context>

<pallas_src>
import jax
import jax.numpy as jnp
from jax.experimental import pallas as pl
from jax.experimental.pallas import tpu as pltpu

LN_EPS = 1e-5  # PyTorch nn.LayerNorm default


def _patch_embed_kernel(x_ref, w_ref, params_ref, o_ref):
    # x_ref:      (TN, K)  patch rows for this token tile
    # w_ref:      (K, E)   projection weight (constant index_map -> stays resident)
    # params_ref: (3, E)   row 0 = conv bias, row 1 = LN gamma, row 2 = LN beta
    # o_ref:      (TN, E)
    x = x_ref[...]
    w = w_ref[...]
    params = params_ref[...].astype(jnp.float32)
    bias = params[0:1, :]
    gamma = params[1:2, :]
    beta = params[2:3, :]

    # MXU matmul in the input dtype with f32 accumulation.
    y = jnp.dot(x, w, preferred_element_type=jnp.float32) + bias

    # LayerNorm over the embedding (last) dim, in f32.
    mean = jnp.mean(y, axis=-1, keepdims=True)
    cent = y - mean
    var = jnp.mean(cent * cent, axis=-1, keepdims=True)
    y_norm = cent * jax.lax.rsqrt(var + LN_EPS)
    o_ref[...] = (y_norm * gamma + beta).astype(o_ref.dtype)


def _round_up(a, m):
    return ((a + m - 1) // m) * m


def patch_embed_forward(x, w_conv, b_conv, gamma, beta, patch_size, tile_n=256):
    """x: (B, Cin, T, H, W).  Returns (B, E, T, H//p, W//p)."""
    B, Cin, T, H, W = x.shape
    p = patch_size
    E = w_conv.shape[0]
    Hp, Wp = H // p, W // p
    K = Cin * p * p
    N = B * T * Hp * Wp

    # Patch extraction glue, feature order (Cin, kh, kw) to match conv weight.
    # (B,C,T,Hp,p,Wp,p) -> (B,T,Hp,Wp,C,p,p) -> (N,K)
    xp = x.reshape(B, Cin, T, Hp, p, Wp, p)
    xp = jnp.transpose(xp, (0, 2, 3, 5, 1, 4, 6)).reshape(N, K)

    # conv weight (E, Cin, 1, p, p) -> (K, E); keep it in the input dtype so the
    # MXU consumes it directly (no per-grid-step cast inside the kernel).
    w_mat = w_conv.reshape(E, K).T.astype(x.dtype)

    # Pack LN / bias parameters into one (3, E) f32 block (single DMA stream).
    params = jnp.stack(
        [
            b_conv.astype(jnp.float32),
            gamma.astype(jnp.float32),
            beta.astype(jnp.float32),
        ],
        axis=0,
    )

    # Big token tiles; clamp for tiny inputs; ragged tail handled by masking.
    tile_n = max(8, min(tile_n, _round_up(N, 8)))
    grid = (pl.cdiv(N, tile_n),)

    out = pl.pallas_call(
        _patch_embed_kernel,
        out_shape=jax.ShapeDtypeStruct((N, E), x.dtype),
        grid_spec=pltpu.PrefetchScalarGridSpec(
            num_scalar_prefetch=0,
            grid=grid,
            in_specs=[
                pl.BlockSpec((tile_n, K), lambda i: (i, 0)),
                pl.BlockSpec((K, E), lambda i: (0, 0)),
                pl.BlockSpec((3, E), lambda i: (0, 0)),
            ],
            out_specs=pl.BlockSpec((tile_n, E), lambda i: (i, 0)),
        ),
        compiler_params=pltpu.CompilerParams(
            dimension_semantics=("parallel",),
            # Allow XLA to fuse the patch transpose/reshape producer into the
            # pallas_call input instead of materializing an extra HBM copy.
            allow_input_fusion=[True, False, False],
        ),
    )(xp, w_mat, params)

    # Back to PyTorch output layout (B, E, T, Hp, Wp).
    out = out.reshape(B, T, Hp, Wp, E)
    return jnp.transpose(out, (0, 4, 1, 2, 3))


def _reference(x, w_conv, b_conv, gamma, beta, p):
    """Plain-JAX reference mirroring the PyTorch forward."""
    B, Cin, T, H, W = x.shape
    E = w_conv.shape[0]
    Hp, Wp = H // p, W // p
    K = Cin * p * p
    xp = x.reshape(B, Cin, T, Hp, p, Wp, p)
    xp = jnp.transpose(xp, (0, 2, 3, 5, 1, 4, 6)).reshape(-1, K)
    y = xp @ w_conv.reshape(E, K).T + b_conv
    mean = jnp.mean(y, axis=-1, keepdims=True)
    var = jnp.mean((y - mean) ** 2, axis=-1, keepdims=True)
    y = (y - mean) / jnp.sqrt(var + LN_EPS) * gamma + beta
    y = y.reshape(B, T, Hp, Wp, E)
    return jnp.transpose(y, (0, 4, 1, 2, 3))


if __name__ == "__main__":
    # Small shapes consistent with the module: conv (1,p,p)/stride(1,p,p).
    B, Cin, T, H, W = 2, 3, 2, 16, 16
    p = 4
    E = 32

    key = jax.random.PRNGKey(0)
    k1, k2, k3, k4, k5 = jax.random.split(key, 5)
    x = jax.random.normal(k1, (B, Cin, T, H, W), dtype=jnp.float32)
    w_conv = 0.05 * jax.random.normal(k2, (E, Cin, 1, p, p), dtype=jnp.float32)
    b_conv = 0.1 * jax.random.normal(k3, (E,), dtype=jnp.float32)
    gamma = 1.0 + 0.05 * jax.random.normal(k4, (E,), dtype=jnp.float32)
    beta = 0.05 * jax.random.normal(k5, (E,), dtype=jnp.float32)

    fwd = jax.jit(
        lambda x_, wc, bc, g, bt: patch_embed_forward(x_, wc, bc, g, bt, patch_size=p)
    )
    out = fwd(x, w_conv, b_conv, gamma, beta)
    out = jax.block_until_ready(out)

    ref = _reference(x, w_conv, b_conv, gamma, beta, p)
    assert out.shape == (B, E, T, H // p, W // p), out.shape
    assert jnp.allclose(out, ref, atol=1e-4, rtol=1e-4), float(
        jnp.max(jnp.abs(out - ref))
    )
    print("KERNEL_OK")
</pallas_src>

<mosaic_0001>
module attributes {stable_mosaic.version = 11 : i64} {
  func.func @_patch_embed_kernel(%arg0: i32, %arg1: memref<64x48xf32, #tpu.memory_space<vmem>>, %arg2: memref<48x32xf32, #tpu.memory_space<vmem>>, %arg3: memref<3x32xf32, #tpu.memory_space<vmem>>, %arg4: memref<64x32xf32, #tpu.memory_space<vmem>>) attributes {dimension_semantics = [#tpu.dimension_semantics<parallel>], iteration_bounds = array<i64: 1>, scalar_prefetch = 0 : i64, scratch_operands = 0 : i64, tpu.core_type = #tpu.core_type<tc>, window_params = [{transform_indices = @transform_0, window_bounds = array<i64: 64, 48>}, {pipeline_mode = #tpu.pipeline_mode<synchronous>, transform_indices = @transform_1, window_bounds = array<i64: 48, 32>}, {pipeline_mode = #tpu.pipeline_mode<synchronous>, transform_indices = @transform_2, window_bounds = array<i64: 3, 32>}, {transform_indices = @transform_3, window_bounds = array<i64: 64, 32>}]} {
    %c0 = arith.constant 0 : index
    %c0_0 = arith.constant 0 : index
    %0 = vector.load %arg1[%c0, %c0_0] : memref<64x48xf32, #tpu.memory_space<vmem>>, vector<64x48xf32>
    %c0_1 = arith.constant 0 : index
    %c0_2 = arith.constant 0 : index
    %1 = vector.load %arg2[%c0_1, %c0_2] : memref<48x32xf32, #tpu.memory_space<vmem>>, vector<48x32xf32>
    %c0_3 = arith.constant 0 : index
    %c0_4 = arith.constant 0 : index
    %2 = vector.load %arg3[%c0_3, %c0_4] : memref<3x32xf32, #tpu.memory_space<vmem>>, vector<3x32xf32>
    %3 = vector.extract_strided_slice %2 {offsets = [0, 0], sizes = [1, 32], strides = [1, 1]} : vector<3x32xf32> to vector<1x32xf32>
    %4 = vector.extract_strided_slice %2 {offsets = [1, 0], sizes = [1, 32], strides = [1, 1]} : vector<3x32xf32> to vector<1x32xf32>
    %5 = vector.extract_strided_slice %2 {offsets = [2, 0], sizes = [1, 32], strides = [1, 1]} : vector<3x32xf32> to vector<1x32xf32>
    %cst = arith.constant dense<0.000000e+00> : vector<64x32xf32>
    %6 = tpu.matmul %0, %1, %cst {dimension_numbers = #tpu.dot_dimension_numbers<[1], [0], [0], [1], [0, 0, 1, 1], [], []>} : vector<64x48xf32>, vector<48x32xf32>, vector<64x32xf32> -> vector<64x32xf32>
    %7 = vector.broadcast %3 : vector<1x32xf32> to vector<64x32xf32>
    %8 = arith.addf %6, %7 : vector<64x32xf32>
    %cst_5 = arith.constant dense<0.000000e+00> : vector<64xf32>
    %9 = vector.multi_reduction <add>, %8, %cst_5 [1] : vector<64x32xf32> to vector<64xf32>
    %10 = vector.shape_cast %9 : vector<64xf32> to vector<64x1xf32>
    %cst_6 = arith.constant 3.200000e+01 : f32
    %11 = vector.broadcast %cst_6 : f32 to vector<64x1xf32>
    %12 = arith.divf %10, %11 : vector<64x1xf32>
    %13 = vector.broadcast %12 : vector<64x1xf32> to vector<64x32xf32>
    %14 = arith.subf %8, %13 : vector<64x32xf32>
    %15 = arith.mulf %14, %14 : vector<64x32xf32>
    %cst_7 = arith.constant dense<0.000000e+00> : vector<64xf32>
    %16 = vector.multi_reduction <add>, %15, %cst_7 [1] : vector<64x32xf32> to vector<64xf32>
    %17 = vector.shape_cast %16 : vector<64xf32> to vector<64x1xf32>
    %cst_8 = arith.constant 3.200000e+01 : f32
    %18 = vector.broadcast %cst_8 : f32 to vector<64x1xf32>
    %19 = arith.divf %17, %18 : vector<64x1xf32>
    %cst_9 = arith.constant 9.99999974E-6 : f32
    %20 = vector.broadcast %cst_9 : f32 to vector<64x1xf32>
    %21 = arith.addf %19, %20 : vector<64x1xf32>
    %22 = math.rsqrt %21 : vector<64x1xf32>
    %23 = vector.broadcast %22 : vector<64x1xf32> to vector<64x32xf32>
    %24 = arith.mulf %14, %23 : vector<64x32xf32>
    %25 = vector.broadcast %4 : vector<1x32xf32> to vector<64x32xf32>
    %26 = arith.mulf %24, %25 : vector<64x32xf32>
    %27 = vector.broadcast %5 : vector<1x32xf32> to vector<64x32xf32>
    %28 = arith.addf %26, %27 : vector<64x32xf32>
    %c0_10 = arith.constant 0 : index
    %c0_11 = arith.constant 0 : index
    %29 = vector.load %arg4[%c0_10, %c0_11] : memref<64x32xf32, #tpu.memory_space<vmem>>, vector<64x32xf32>
    tpu.vector_store %arg4[%c0_10, %c0_11], %28 {strides = array<i32>} : memref<64x32xf32, #tpu.memory_space<vmem>>, vector<64x32xf32>,
    return
  }
  func.func @transform_0(%arg0: i32) -> (i32, i32) {
    %c0_i32 = arith.constant 0 : i32
    %c0_i32_0 = arith.constant 0 : i32
    return %arg0, %c0_i32 : i32, i32
  }
  func.func @transform_1(%arg0: i32) -> (i32, i32) {
    %c0_i32 = arith.constant 0 : i32
    %c0_i32_0 = arith.constant 0 : i32
    %c0_i32_1 = arith.constant 0 : i32
    return %c0_i32, %c0_i32_0 : i32, i32
  }
  func.func @transform_2(%arg0: i32) -> (i32, i32) {
    %c0_i32 = arith.constant 0 : i32
    %c0_i32_0 = arith.constant 0 : i32
    %c0_i32_1 = arith.constant 0 : i32
    return %c0_i32, %c0_i32_0 : i32, i32
  }
  func.func @transform_3(%arg0: i32) -> (i32, i32) {
    %c0_i32 = arith.constant 0 : i32
    %c0_i32_0 = arith.constant 0 : i32
    return %arg0, %c0_i32 : i32, i32
  }
}

</mosaic_0001>

<bundles_post_ra>
// kernel: _lambda_.1
= control target key start
LH: loop header
LB: loop body
LE: loop exit
PB: predicated region body
PF: predicated region fallthrough
CT: control target
= control target key end

     0   :  { %vm34_vm0 = vcmask 392192   ;;  %s587_s0 = inlined_call_operand.vmem [shape: f32[64,48], index: 0, kind: input, shape index: {}]   ;;  %s588_s1 = inlined_call_operand.vmem [shape: f32[48,32], index: 1, kind: input, shape index: {}]   ;;  %s589_s2 = inlined_call_operand.vmem [shape: f32[3,32], index: 2, kind: input, shape index: {}]   ;;  %s590_s3 = inlined_call_operand.hbm [shape: f32[64,32], index: 3, kind: output, shape index: {}]  }
   0x1   :  { %v23_v0 = vld [vmem:[%s588_s1] sm:$0xff]  ;;  %v24_v1 = vld [vmem:[%s588_s1 + $0x8] sm:$0xff]  ;;  %v25_v2 = vld [vmem:[%s588_s1 + $0x10] sm:$0xff] }
   0x2   :  { %v364_v3 = vpack.c.bf16 %v24_v1, %v23_v0  ;;  %v26_v4 = vld [vmem:[%s588_s1 + $0x18] sm:$0xff]  ;;  %v27_v6 = vld [vmem:[%s588_s1 + $0x20] sm:$0xff]  ;;  %v28_v7 = vld [vmem:[%s588_s1 + $0x28] sm:$0xff] }
   0x3   :  { %v368_v5 = vpack.c.bf16 %v26_v4, %v25_v2  ;;  %v15_v8 = vld [vmem:[%s587_s0] sm:$0xff]  ;;  %v372_v10 = vpack.c.bf16 %v28_v7, %v27_v6 }
   0x4   :  { %365 = vmatprep.subr.bf16.mxu0 %v364_v3  ;;  %376 = vmatprep.subr.bf16.mxu1 %v364_v3  ;;  %v19_v9 = vld [vmem:[%s587_s0 + $0x20] sm:$0xff] }
   0x5   :  { %367 = vmatpush3.bf16.msra.mxu0 %v364_v3  ;;  %379 = vmatpush3.bf16.msra.mxu1 %v364_v3 }
   0x6   :  { %369 = vmatprep.subr.bf16.mxu0 %v368_v5  ;;  %377 = vmatprep.subr.bf16.mxu1 %v368_v5 }
   0x7   :  { %8 = vsyncpa [#allocation3], 0  ;;  %352 = vmatprep.mubr.msk.f32.mxu0 %vm34_vm0, %v15_v8  ;;  %358 = vmatprep.mubr.msk.f32.mxu1 %vm34_vm0, %v19_v9  ;;  %v16_v11 = vld [vmem:[%s587_s0 + $0x8] sm:$0xff]  ;;  %v17_v13 = vld [vmem:[%s587_s0 + $0x10] sm:$0xff]  ;;  %v30_v17 = vlaneseq  ;;  %vm164_vm1 = vcmask 261120  }
   0x8   :  { %v20_v12 = vld [vmem:[%s587_s0 + $0x28] sm:$0xff]  ;;  %v21_v14 = vld [vmem:[%s587_s0 + $0x30] sm:$0xff]  ;;  %v18_v15 = vld [vmem:[%s587_s0 + $0x18] sm:$0xff] }
   0x9   :  { %371 = vmatpush3.bf16.msra.mxu0 %v368_v5  ;;  %380 = vmatpush3.bf16.msra.mxu1 %v368_v5  ;;  %v22_v16 = vld [vmem:[%s587_s0 + $0x38] sm:$0xff]  ;;  %v498_v18 = vshrl.u32 %v30_v17, 7  ;;  %v504_v20 = vld [vmem:[%s589_s2] sm:$0x7]  ;;  %s425_s0 = smov [#allocation2]  }
   0xa   :  { %373 = vmatprep.subr.bf16.mxu0 %v372_v10  ;;  %378 = vmatprep.subr.bf16.mxu1 %v372_v10  ;;  %s307_s2 = sshll.u32 %s425_s0, 4  ;;  %s308_s2 = int_to_ptr.vmem [resolvable:$true] %s307_s2 }
   0xb   :  { %v32_v19 = vsub.s32 0, %v498_v18  ;;  %s401_s14 = scalar_lea.vmem %s308_s2, 1024  ;;  %p406_p1 = scmp.lt.s32.totalorder %s308_s2, %s308_s2 }
   0xc   :  { %p402_p0 = scmp.ne.s32.totalorder %s308_s2, %s401_s14  ;;  %p407_p2 = scmp.lt.s32.totalorder %s401_s14, %s401_s14 }
   0xd   :  { %375 = vmatpush3.bf16.msra.mxu0 %v372_v10  ;;  %381 = vmatpush3.bf16.msra.mxu1 %v372_v10  ;;  %v33_v21 = vrot.slane %v504_v20, %v32_v19 }
   0xe   :  { %p408_p3 = por %p407_p2, %p406_p1 }
  0x10   :  { %353 = vmatmul.mubr.msk.f32.vlgmr.msra.gmra.mrb[0].mxu0 %vm34_vm0, %v16_v11  ;;  %359 = vmatmul.mubr.msk.f32.vlgmr.msra.gmra.mrb[0].mxu1 %vm34_vm0, %v20_v12  ;;  %p409_p4 = pnand %p408_p3, %p402_p0 }
  0x11   :  { %355 = vmatprep.mubr.msk.f32.mxu0 %vm34_vm0, %v17_v13  ;;  %361 = vmatprep.mubr.msk.f32.mxu1 %vm34_vm0, %v21_v14 }
  0x14   :  { %356 = vmatmul.mubr.msk.f32.gmra.mrb[2].mxu0 %vm34_vm0, %v18_v15  ;;  %362 = vmatmul.mubr.msk.f32.gmra.mrb[2].mxu1 %vm34_vm0, %v22_v16 }
  0xe3   :  { %v354_v22 = vpop.f32.mrb[0].mxu0  ;;  %v360_v23 = vpop.f32.mrb[0].mxu1 }
  0xe4   :  { %v131_v24 = vadd.f32 %v354_v22, %v33_v21  ;;  %v151_v25 = vadd.f32 %v360_v23, %v33_v21  ;;  %v125_v26 = vpop.f32.mrb[1].mxu0  ;;  %v145_v27 = vpop.f32.mrb[1].mxu1 }
  0xe5   :  { %v126_v28 = vadd.f32 %v125_v26, %v33_v21  ;;  %v146_v37 = vadd.f32 %v145_v27, %v33_v21 }
  0xe6   :  { %v180_v29 = vsel %vm164_vm1, %v151_v25, 0.0  ;;  %v168_v30 = vsel %vm164_vm1, %v131_v24, 0.0 }
  0xe7   :  { %181 = vadd.xlane.f32.xlu1 %v180_v29  ;;  %169 = vadd.xlane.f32.xlu0 %v168_v30  ;;  %v357_v31 = vpop.f32.mrb[2].mxu0  ;;  %v363_v32 = vpop.f32.mrb[2].mxu1  ;;  %v165_v39 = vsel %vm164_vm1, %v126_v28, 0.0  ;;  %v177_v43 = vsel %vm164_vm1, %v146_v37, 0.0 }
  0xe8   :  { %v141_v33 = vadd.f32 %v357_v31, %v33_v21  ;;  %v135_v34 = vpop.f32.mrb[3].mxu0  ;;  %v155_v35 = vpop.f32.mrb[3].mxu1  ;;  %v161_v40 = vadd.f32 %v363_v32, %v33_v21 }
  0xe9   :  { %v136_v36 = vadd.f32 %v135_v34, %v33_v21  ;;  %v156_v41 = vadd.f32 %v155_v35, %v33_v21 }
  0xea   :  { %v174_v38 = vsel %vm164_vm1, %v141_v33, 0.0  ;;  %v186_v44 = vsel %vm164_vm1, %v161_v40, 0.0 }
  0xeb   :  { %175 = vadd.xlane.f32.xlu1 %v174_v38  ;;  %166 = vadd.xlane.f32.xlu0 %v165_v39  ;;  %v171_v42 = vsel %vm164_vm1, %v136_v36, 0.0  ;;  %v183_v45 = vsel %vm164_vm1, %v156_v41, 0.0 }
  0xef   :  { %172 = vadd.xlane.f32.xlu1 %v171_v42  ;;  %178 = vadd.xlane.f32.xlu0 %v177_v43 }
  0xf3   :  { %187 = vadd.xlane.f32.xlu1 %v186_v44  ;;  %184 = vadd.xlane.f32.xlu0 %v183_v45 }
 0x174   :  { %v182_v46 = vpop.xlane.xlu1 %181  ;;  %v170_v47 = vpop.xlane.xlu0 %169 }
 0x175   :  { %v195_v48 = vmul.f32 0.03125, %v182_v46  ;;  %v191_v49 = vmul.f32 0.03125, %v170_v47 }
 0x177   :  { %v515_v50 = vsub.f32 %v151_v25, %v195_v48  ;;  %v517_v51 = vsub.f32 %v131_v24, %v191_v49 }
 0x178   :  { %v176_v52 = vpop.xlane.xlu1 %175  ;;  %v167_v53 = vpop.xlane.xlu0 %166 }
 0x179   :  { %v193_v54 = vmul.f32 0.03125, %v176_v52  ;;  %v190_v55 = vmul.f32 0.03125, %v167_v53  ;;  %v207_v56 = vmul.f32 %v517_v51, %v517_v51  ;;  %v211_v60 = vmul.f32 %v515_v50, %v515_v50 }
 0x17b   :  { %v521_v57 = vsub.f32 %v141_v33, %v193_v54  ;;  %v523_v58 = vsub.f32 %v126_v28, %v190_v55  ;;  %v217_v59 = vsel %vm164_vm1, %v207_v56, 0.0  ;;  %v229_v5 = vsel %vm164_vm1, %v211_v60, 0.0 }
 0x17c   :  { %218 = vadd.xlane.f32.xlu1 %v217_v59  ;;  %v173_v61 = vpop.xlane.xlu1 %172  ;;  %v179_v62 = vpop.xlane.xlu0 %178 }
 0x17d   :  { %v192_v63 = vmul.f32 0.03125, %v173_v61  ;;  %v194_v0 = vmul.f32 0.03125, %v179_v62  ;;  %v206_v1 = vmul.f32 %v523_v58, %v523_v58  ;;  %v209_v2 = vmul.f32 %v521_v57, %v521_v57 }
 0x17f   :  { %v532_v3 = vsub.f32 %v136_v36, %v192_v63  ;;  %v534_v4 = vsub.f32 %v146_v37, %v194_v0  ;;  %v214_v6 = vsel %vm164_vm1, %v206_v1, 0.0  ;;  %v223_v12 = vsel %vm164_vm1, %v209_v2, 0.0 }
 0x180   :  { %230 = vadd.xlane.f32.xlu1 %v229_v5  ;;  %v188_v7 = vpop.xlane.xlu1 %187  ;;  %215 = vadd.xlane.f32.xlu0 %v214_v6  ;;  %v185_v8 = vpop.xlane.xlu0 %184  ;;  %v272_v37 = vsub.s32 1, %v498_v18 }
 0x181   :  { %v197_v9 = vmul.f32 0.03125, %v188_v7  ;;  %v196_v10 = vmul.f32 0.03125, %v185_v8  ;;  %v210_v11 = vmul.f32 %v534_v4, %v534_v4  ;;  %v208_v16 = vmul.f32 %v532_v3, %v532_v3 }
 0x182   :  { %v273_v45 = vrot.slane %v504_v20, %v272_v37 }
 0x183   :  { %v541_v13 = vsub.f32 %v161_v40, %v197_v9  ;;  %v543_v14 = vsub.f32 %v156_v41, %v196_v10  ;;  %v226_v15 = vsel %vm164_vm1, %v210_v11, 0.0  ;;  %v220_v21 = vsel %vm164_vm1, %v208_v16, 0.0 }
 0x184   :  { %224 = vadd.xlane.f32.xlu1 %v223_v12  ;;  %227 = vadd.xlane.f32.xlu0 %v226_v15  ;;  %v284_v40 = vsub.s32 2, %v498_v18 }
 0x185   :  { %v213_v17 = vmul.f32 %v541_v13, %v541_v13  ;;  %v212_v22 = vmul.f32 %v543_v14, %v543_v14 }
 0x186   :  { %v285_v49 = vrot.slane %v504_v20, %v284_v40 }
 0x187   :  { %v235_v19 = vsel %vm164_vm1, %v213_v17, 0.0  ;;  %v232_v23 = vsel %vm164_vm1, %v212_v22, 0.0 }
 0x188   :  { %236 = vadd.xlane.f32.xlu1 %v235_v19  ;;  %221 = vadd.xlane.f32.xlu0 %v220_v21 }
 0x18c   :  { %233 = vadd.xlane.f32.xlu0 %v232_v23 }
 0x209   :  { %v219_v24 = vpop.xlane.xlu1 %218 }
 0x20a   :  { %v239_v25 = vmul.f32 0.03125, %v219_v24 }
 0x20c   :  { %v247_v26 = vadd.f32 1e-05, %v239_v25 }
 0x20d   :  { %v231_v27 = vpop.xlane.xlu1 %230  ;;  %v216_v28 = vpop.xlane.xlu0 %215 }
 0x20e   :  { %385 = vrsqrt.f32 %v247_v26  ;;  %v243_v29 = vmul.f32 0.03125, %v231_v27  ;;  %v238_v30 = vmul.f32 0.03125, %v216_v28 }
 0x210   :  { %v251_v31 = vadd.f32 1e-05, %v243_v29  ;;  %v246_v32 = vadd.f32 1e-05, %v238_v30 }
 0x211   :  { %v225_v33 = vpop.xlane.xlu1 %224  ;;  %v228_v34 = vpop.xlane.xlu0 %227 }
 0x212   :  { %387 = vrsqrt.f32 %v251_v31  ;;  %v241_v35 = vmul.f32 0.03125, %v225_v33  ;;  %v242_v36 = vmul.f32 0.03125, %v228_v34 }
 0x213   :  { %389 = vrsqrt.f32 %v246_v32 }
 0x214   :  { %v249_v38 = vadd.f32 1e-05, %v241_v35  ;;  %v250_v39 = vadd.f32 1e-05, %v242_v36 }
 0x215   :  { %v237_v41 = vpop.xlane.xlu1 %236  ;;  %v222_v42 = vpop.xlane.xlu0 %221 }
 0x216   :  { %391 = vrsqrt.f32 %v249_v38  ;;  %v245_v43 = vmul.f32 0.03125, %v237_v41  ;;  %v240_v44 = vmul.f32 0.03125, %v222_v42 }
 0x217   :  { %393 = vrsqrt.f32 %v250_v39 }
 0x218   :  { %v386_v46 = vpop.eup %385  ;;  %v253_v47 = vadd.f32 1e-05, %v245_v43  ;;  %v248_v48 = vadd.f32 1e-05, %v240_v44 }
 0x219   :  { %v263_v52 = vmul.f32 %v386_v46, %v517_v51  ;;  %v234_v53 = vpop.xlane.xlu0 %233 }
 0x21a   :  { %395 = vrsqrt.f32 %v253_v47  ;;  %v244_v54 = vmul.f32 0.03125, %v234_v53 }
 0x21b   :  { %v275_v55 = vmul.f32 %v273_v45, %v263_v52  ;;  %397 = vrsqrt.f32 %v248_v48 }
 0x21c   :  { %v388_v18 = vpop.eup %387  ;;  %v252_v56 = vadd.f32 1e-05, %v244_v54 }
 0x21d   :  { %v390_v59 = vpop.eup %389  ;;  %v287_v60 = vadd.f32 %v285_v49, %v275_v55  ;;  %v267_v61 = vmul.f32 %v388_v18, %v515_v50 }
 0x21e   :  { %v262_v62 = vmul.f32 %v390_v59, %v523_v58  ;;  %399 = vrsqrt.f32 %v252_v56 }
 0x21f   :  { %295 = vst.msk [vmem:[#allocation2 + $0x8] sm:$0xff] %vm164_vm1, %v287_v60  ;;  %v279_v63 = vmul.f32 %v273_v45, %v267_v61 }
 0x220   :  { %v392_v20 = vpop.eup %391  ;;  %v274_v0 = vmul.f32 %v273_v45, %v262_v62 }
 0x221   :  { %v394_v51 = vpop.eup %393  ;;  %v291_v1 = vadd.f32 %v285_v49, %v279_v63  ;;  %v265_v2 = vmul.f32 %v392_v20, %v521_v57 }
 0x222   :  { %v286_v5 = vadd.f32 %v285_v49, %v274_v0  ;;  %v266_v6 = vmul.f32 %v394_v51, %v534_v4 }
 0x223   :  { %299 = vst.msk [vmem:[#allocation2 + $0x28] sm:$0xff] %vm164_vm1, %v291_v1  ;;  %v277_v7 = vmul.f32 %v273_v45, %v265_v2 }
 0x224   :  { %v396_v8 = vpop.eup %395  ;;  %294 = vst.msk [vmem:[#allocation2] sm:$0xff] %vm164_vm1, %v286_v5  ;;  %v278_v50 = vmul.f32 %v273_v45, %v266_v6 }
 0x225   :  { %v398_v58 = vpop.eup %397  ;;  %v289_v9 = vadd.f32 %v285_v49, %v277_v7  ;;  %v269_v10 = vmul.f32 %v396_v8, %v541_v13 }
 0x226   :  { %v290_v11 = vadd.f32 %v285_v49, %v278_v50  ;;  %v264_v12 = vmul.f32 %v398_v58, %v532_v3 }
 0x227   :  { %297 = vst.msk [vmem:[#allocation2 + $0x18] sm:$0xff] %vm164_vm1, %v289_v9  ;;  %v281_v57 = vmul.f32 %v273_v45, %v269_v10 }
 0x228   :  { %v400_v15 = vpop.eup %399  ;;  %298 = vst.msk [vmem:[#allocation2 + $0x20] sm:$0xff] %vm164_vm1, %v290_v11  ;;  %v276_v4 = vmul.f32 %v273_v45, %v264_v12 }
 0x229   :  { %v293_v16 = vadd.f32 %v285_v49, %v281_v57  ;;  %v268_v17 = vmul.f32 %v400_v15, %v543_v14 }
 0x22a   :  { %v288_v19 = vadd.f32 %v285_v49, %v276_v4 }
 0x22b   :  { %301 = vst.msk [vmem:[#allocation2 + $0x38] sm:$0xff] %vm164_vm1, %v293_v16  ;;  %v280_v21 = vmul.f32 %v273_v45, %v268_v17 }
 0x22c   :  { %296 = vst.msk [vmem:[#allocation2 + $0x10] sm:$0xff] %vm164_vm1, %v288_v19 }
 0x22d   :  { %v292_v13 = vadd.f32 %v285_v49, %v280_v21 }
 0x22f   :  { %300 = vst.msk [vmem:[#allocation2 + $0x30] sm:$0xff] %vm164_vm1, %v292_v13 }
 0x230   :  { %412 = shalt.err (!%p409_p4)
}
 0x231   :  { %s413_s17 = scalar_lea.hbm %s590_s3, 1024 }
 0x232   :  { %p414_p5 = scmp.ne.s32.totalorder %s590_s3, %s413_s17  ;;  %p417_p6 = scmp.lt.u32.totalorder %s413_s17, %s590_s3 }
 0x234   :  { %p419_p7 = pnand %p417_p6, %p414_p5 }
 0x236   :  { %422 = shalt.err (!%p419_p7)
}
 0x237   :  { %s426_s22 = smov 128   ;;  %s427_s23 = smov 8  }
 0x238   :  { %313 = dma.vmem_to_hbm [thread:$0]  %s308_s2, 1024, %s590_s3, [#allocation3], %s426_s22, %s426_s22, %s427_s23  }
 0x239   :  { %423 = dma.done.wait [#allocation3], 1024  }
 0x23a   :  { %424 = vsyncadd [#allocation3], 4294966272 }
 0x23b   :  { %317 = vsyncpa [#allocation3], 1 }

</bundles_post_ra>
